<compile_context>
chip_gen: v5e
topology: v5e:2x2
jax: 0.10.0
libtpu: 0.0.40
codegen_flags: <defaults>
</compile_context>

<pallas_src>
import functools

import jax
import jax.numpy as jnp
from jax import lax
from jax.experimental import pallas as pl
from jax.experimental.pallas import tpu as pltpu


def _round_up(x, m):
    return (x + m - 1) // m * m


def _channel_layernorm_kernel(lvl_ref, x_ref, w_ref, b_ref, o_ref, *, eps):
    # lvl_ref: scalar-prefetch SMEM table (used only by the index_maps).
    # x_ref/o_ref: (C, Tt) block — reduce over C (sublanes), T on lanes.
    # w_ref/b_ref: (C, 1) per-level affine params.
    x = x_ref[...].astype(jnp.float32)
    mu = jnp.mean(x, axis=0, keepdims=True)                 # (1, Tt)
    res = x - mu
    sigma = jnp.mean(res * res, axis=0, keepdims=True)      # biased var (torch)
    inv = lax.rsqrt(sigma + eps)                            # EUP transcendental
    out = res * inv
    out = out * w_ref[...] + b_ref[...]                     # per-channel affine
    o_ref[...] = out.astype(o_ref.dtype)


def _pick_t_tile(C, max_level_T, *, cap=512, budget_bytes=12 * 1024 * 1024):
    """Largest lane tile (multiple of 128) whose double-buffered in+out f32
    blocks fit the budget; never wider than the longest (128-rounded) level."""
    per_lane_bytes = 4 * C * 4          # 2 bufs x (in + out) x C x 4B
    t = max(128, min(cap, (budget_bytes // per_lane_bytes) // 128 * 128))
    t = min(t, _round_up(max_level_T, 128))
    return int(t)


def fused_channel_layernorm(xs, weights, biases, *, eps=1e-5, t_tile=None):
    """Channel LayerNorm on a list of (B, C, T_i) arrays in one pallas_call.

    Returns a list of (B, C, T_i) outputs (input dtype preserved).
    """
    assert len(xs) == len(weights) == len(biases)
    B, C, _ = xs[0].shape
    dtype = xs[0].dtype
    Ts = [int(x.shape[-1]) for x in xs]
    if t_tile is None:
        t_tile = _pick_t_tile(C, max(Ts))

    # Pad each level's T up to a multiple of the lane tile, concat along T.
    # (XLA fuses the pad+concat into a single producer; padding columns are
    #  zeros -> rsqrt(eps) stays finite and they are sliced away afterwards.)
    n_tiles_per_level = [pl.cdiv(T, t_tile) for T in Ts]
    padded = [jnp.pad(x, ((0, 0), (0, 0), (0, n * t_tile - T)))
              for x, T, n in zip(xs, Ts, n_tiles_per_level)]
    x_cat = jnp.concatenate(padded, axis=-1)                # (B, C, T_cat)
    T_cat = x_cat.shape[-1]
    n_tiles = T_cat // t_tile

    # Per-tile level id, scalar-prefetched into SMEM; drives which level's
    # affine params each T tile loads.
    level_ids = jnp.asarray(
        sum(([i] * n for i, n in enumerate(n_tiles_per_level)), []),
        dtype=jnp.int32)

    w_stack = jnp.stack([jnp.asarray(w, jnp.float32).reshape(C, 1)
                         for w in weights], axis=0)         # (L, C, 1)
    b_stack = jnp.stack([jnp.asarray(b, jnp.float32).reshape(C, 1)
                         for b in biases], axis=0)          # (L, C, 1)

    kernel = functools.partial(_channel_layernorm_kernel, eps=eps)
    y_cat = pl.pallas_call(
        kernel,
        out_shape=jax.ShapeDtypeStruct((B, C, T_cat), dtype),
        grid_spec=pltpu.PrefetchScalarGridSpec(
            num_scalar_prefetch=1,
            grid=(B, n_tiles),
            in_specs=[
                pl.BlockSpec((pl.Squeezed(), C, t_tile),
                             lambda b, t, lvl: (b, 0, t)),
                pl.BlockSpec((pl.Squeezed(), C, 1),
                             lambda b, t, lvl: (lvl[t], 0, 0)),
                pl.BlockSpec((pl.Squeezed(), C, 1),
                             lambda b, t, lvl: (lvl[t], 0, 0)),
            ],
            out_specs=pl.BlockSpec((pl.Squeezed(), C, t_tile),
                                   lambda b, t, lvl: (b, 0, t)),
        ),
        compiler_params=pltpu.CompilerParams(
            dimension_semantics=("parallel", "parallel"),
            vmem_limit_bytes=48 * 1024 * 1024,
        ),
    )(level_ids, x_cat, w_stack, b_stack)

    # Split the concatenated, padded output back into per-level tensors.
    outs = []
    off = 0
    for T, n in zip(Ts, n_tiles_per_level):
        outs.append(y_cat[:, :, off:off + T])
        off += n * t_tile
    return outs


class FPNIdentityPallas:
    """JAX/Pallas port of FPNIdentity: per-level channel LayerNorm."""

    def __init__(self, in_channels, out_channel, scale_factor=2.0,
                 start_level=0, end_level=-1, with_ln=True, eps=1e-5):
        self.in_channels = in_channels
        self.out_channel = out_channel
        self.scale_factor = scale_factor
        self.start_level = start_level
        self.end_level = len(in_channels) if end_level == -1 else end_level
        assert self.end_level <= len(in_channels)
        assert 0 <= self.start_level < self.end_level
        self.with_ln = with_ln
        self.eps = eps
        self.weights = []
        self.biases = []
        for i in range(self.start_level, self.end_level):
            # Mirrors the original module's (double-offset) assert verbatim.
            assert in_channels[i + self.start_level] == out_channel
            if with_ln:
                self.weights.append(jnp.ones((1, out_channel, 1), jnp.float32))
                self.biases.append(jnp.zeros((1, out_channel, 1), jnp.float32))
            else:
                self.weights.append(None)
                self.biases.append(None)

    def __call__(self, inputs, fpn_masks):
        assert len(inputs) == len(self.in_channels)
        assert len(fpn_masks) == len(self.in_channels)
        n_norms = self.end_level - self.start_level
        xs = [inputs[i + self.start_level] for i in range(n_norms)]
        if self.with_ln:
            feats = fused_channel_layernorm(
                xs, self.weights, self.biases, eps=self.eps)
        else:
            feats = xs  # nn.Identity
        return tuple(feats), tuple(fpn_masks)


def _reference_layernorm(x, w, b, eps=1e-5):
    mu = jnp.mean(x, axis=1, keepdims=True)
    res = x - mu
    sigma = jnp.mean(res * res, axis=1, keepdims=True)
    return res / jnp.sqrt(sigma + eps) * w + b


if __name__ == "__main__":
    key = jax.random.PRNGKey(0)
    B, C = 2, 32
    n_levels = 3
    Ts = [16, 8, 4]  # temporal length halves per level (scale_factor=2)

    keys = jax.random.split(key, n_levels)
    inputs = [jax.random.normal(keys[i], (B, C, Ts[i]), jnp.float32)
              for i in range(n_levels)]
    fpn_masks = [jnp.ones((B, 1, Ts[i]), jnp.bool_) for i in range(n_levels)]

    model = FPNIdentityPallas(
        in_channels=[C] * n_levels, out_channel=C, with_ln=True)
    # Non-trivial per-level affine params to exercise the level-id indexing.
    model.weights = [jnp.full((1, C, 1), 1.0 + 0.1 * i, jnp.float32)
                     for i in range(n_levels)]
    model.biases = [jnp.full((1, C, 1), 0.05 * i, jnp.float32)
                    for i in range(n_levels)]

    feats, masks = model(inputs, fpn_masks)
    feats = jax.block_until_ready(feats)

    # Correctness check against pure-JAX reference (PyTorch LayerNorm math).
    for i in range(n_levels):
        ref = _reference_layernorm(inputs[i], model.weights[i],
                                   model.biases[i], eps=model.eps)
        assert feats[i].shape == inputs[i].shape
        assert jnp.allclose(feats[i], ref, atol=2e-5, rtol=1e-4), \
            f"level {i} mismatch"
        assert jnp.array_equal(masks[i], fpn_masks[i])

    print("KERNEL_OK")
</pallas_src>

<mosaic_0001>
module attributes {stable_mosaic.version = 11 : i64} {
  func.func @_channel_layernorm_kernel(%arg0: i32, %arg1: i32, %arg2: memref<3xi32, #tpu.memory_space<smem>>, %arg3: memref<1x32x128xf32, #tpu.memory_space<vmem>>, %arg4: memref<1x32x1xf32, #tpu.memory_space<vmem>>, %arg5: memref<1x32x1xf32, #tpu.memory_space<vmem>>, %arg6: memref<1x32x128xf32, #tpu.memory_space<vmem>>) attributes {dimension_semantics = [#tpu.dimension_semantics<parallel>, #tpu.dimension_semantics<parallel>], iteration_bounds = array<i64: 2, 3>, scalar_prefetch = 1 : i64, scratch_operands = 0 : i64, tpu.core_type = #tpu.core_type<tc>, window_params = [{transform_indices = @transform_0, window_bounds = array<i64: 1, 32, 128>}, {transform_indices = @transform_1, window_bounds = array<i64: 1, 32, 1>}, {transform_indices = @transform_2, window_bounds = array<i64: 1, 32, 1>}, {transform_indices = @transform_3, window_bounds = array<i64: 1, 32, 128>}]} {
    %c0 = arith.constant 0 : index
    %c0_0 = arith.constant 0 : index
    %c0_1 = arith.constant 0 : index
    %0 = vector.load %arg3[%c0, %c0_0, %c0_1] : memref<1x32x128xf32, #tpu.memory_space<vmem>>, vector<1x32x128xf32>
    %1 = vector.shape_cast %0 : vector<1x32x128xf32> to vector<32x128xf32>
    %cst = arith.constant dense<0.000000e+00> : vector<128xf32>
    %2 = vector.multi_reduction <add>, %1, %cst [0] : vector<32x128xf32> to vector<128xf32>
    %3 = vector.shape_cast %2 : vector<128xf32> to vector<1x128xf32>
    %cst_2 = arith.constant 3.200000e+01 : f32
    %4 = vector.broadcast %cst_2 : f32 to vector<1x128xf32>
    %5 = arith.divf %3, %4 : vector<1x128xf32>
    %6 = vector.broadcast %5 : vector<1x128xf32> to vector<32x128xf32>
    %7 = arith.subf %1, %6 : vector<32x128xf32>
    %8 = arith.mulf %7, %7 : vector<32x128xf32>
    %cst_3 = arith.constant dense<0.000000e+00> : vector<128xf32>
    %9 = vector.multi_reduction <add>, %8, %cst_3 [0] : vector<32x128xf32> to vector<128xf32>
    %10 = vector.shape_cast %9 : vector<128xf32> to vector<1x128xf32>
    %cst_4 = arith.constant 3.200000e+01 : f32
    %11 = vector.broadcast %cst_4 : f32 to vector<1x128xf32>
    %12 = arith.divf %10, %11 : vector<1x128xf32>
    %cst_5 = arith.constant 9.99999974E-6 : f32
    %13 = vector.broadcast %cst_5 : f32 to vector<1x128xf32>
    %14 = arith.addf %12, %13 : vector<1x128xf32>
    %15 = math.rsqrt %14 : vector<1x128xf32>
    %16 = vector.broadcast %15 : vector<1x128xf32> to vector<32x128xf32>
    %17 = arith.mulf %7, %16 : vector<32x128xf32>
    %c0_6 = arith.constant 0 : index
    %c0_7 = arith.constant 0 : index
    %c0_8 = arith.constant 0 : index
    %18 = vector.load %arg4[%c0_6, %c0_7, %c0_8] : memref<1x32x1xf32, #tpu.memory_space<vmem>>, vector<1x32x1xf32>
    %19 = vector.shape_cast %18 : vector<1x32x1xf32> to vector<32x1xf32>
    %20 = vector.broadcast %19 : vector<32x1xf32> to vector<32x128xf32>
    %21 = arith.mulf %17, %20 : vector<32x128xf32>
    %c0_9 = arith.constant 0 : index
    %c0_10 = arith.constant 0 : index
    %c0_11 = arith.constant 0 : index
    %22 = vector.load %arg5[%c0_9, %c0_10, %c0_11] : memref<1x32x1xf32, #tpu.memory_space<vmem>>, vector<1x32x1xf32>
    %23 = vector.shape_cast %22 : vector<1x32x1xf32> to vector<32x1xf32>
    %24 = vector.broadcast %23 : vector<32x1xf32> to vector<32x128xf32>
    %25 = arith.addf %21, %24 : vector<32x128xf32>
    %c0_12 = arith.constant 0 : index
    %c0_13 = arith.constant 0 : index
    %c0_14 = arith.constant 0 : index
    %26 = vector.load %arg6[%c0_12, %c0_13, %c0_14] : memref<1x32x128xf32, #tpu.memory_space<vmem>>, vector<1x32x128xf32>
    %27 = vector.shape_cast %26 : vector<1x32x128xf32> to vector<32x128xf32>
    %28 = vector.shape_cast %25 : vector<32x128xf32> to vector<1x32x128xf32>
    tpu.vector_store %arg6[%c0_12, %c0_13, %c0_14], %28 {strides = array<i32>} : memref<1x32x128xf32, #tpu.memory_space<vmem>>, vector<1x32x128xf32>,
    return
  }
  func.func @transform_0(%arg0: i32, %arg1: i32, %arg2: memref<3xi32, #tpu.memory_space<smem>>) -> (i32, i32, i32) {
    %c0_i32 = arith.constant 0 : i32
    %c0_i32_0 = arith.constant 0 : i32
    return %arg0, %c0_i32, %arg1 : i32, i32, i32
  }
  func.func @transform_1(%arg0: i32, %arg1: i32, %arg2: memref<3xi32, #tpu.memory_space<smem>>) -> (i32, i32, i32) {
    %0 = arith.index_cast %arg1 : i32 to index
    %1 = memref.load %arg2[%0] : memref<3xi32, #tpu.memory_space<smem>>
    %c0_i32 = arith.constant 0 : i32
    %c0_i32_0 = arith.constant 0 : i32
    %c0_i32_1 = arith.constant 0 : i32
    return %1, %c0_i32, %c0_i32_0 : i32, i32, i32
  }
  func.func @transform_2(%arg0: i32, %arg1: i32, %arg2: memref<3xi32, #tpu.memory_space<smem>>) -> (i32, i32, i32) {
    %0 = arith.index_cast %arg1 : i32 to index
    %1 = memref.load %arg2[%0] : memref<3xi32, #tpu.memory_space<smem>>
    %c0_i32 = arith.constant 0 : i32
    %c0_i32_0 = arith.constant 0 : i32
    %c0_i32_1 = arith.constant 0 : i32
    return %1, %c0_i32, %c0_i32_0 : i32, i32, i32
  }
  func.func @transform_3(%arg0: i32, %arg1: i32, %arg2: memref<3xi32, #tpu.memory_space<smem>>) -> (i32, i32, i32) {
    %c0_i32 = arith.constant 0 : i32
    %c0_i32_0 = arith.constant 0 : i32
    return %arg0, %c0_i32, %arg1 : i32, i32, i32
  }
}

</mosaic_0001>

<bundles_post_ra>
// kernel: tpu_custom_call.1
= control target key start
LH: loop header
LB: loop body
LE: loop exit
PB: predicated region body
PF: predicated region fallthrough
CT: control target
= control target key end

     0   :  { %s750_s18 = smov [#allocation3]   ;;  %s929_s0 = inlined_call_operand.vmem [shape: s32[3], index: 0, kind: input, shape index: {}]   ;;  %s930_s1 = inlined_call_operand.vmem [shape: f32[2,32,384], index: 1, kind: input, shape index: {}]   ;;  %s931_s2 = inlined_call_operand.vmem [shape: f32[3,32,1], index: 2, kind: input, shape index: {}]   ;;  %s932_s3 = inlined_call_operand.vmem [shape: f32[3,32,1], index: 3, kind: input, shape index: {}]   ;;  %s933_s4 = inlined_call_operand.hbm [shape: f32[2,32,384], index: 4, kind: output, shape index: {}]  }
   0x1   :  { %s10_s17 = sshll.u32 %s929_s0, 4  ;;  %s11_s17 = int_to_ptr.vmem [resolvable:$true] %s10_s17 }
   0x2   :  { %13 = dma.vmem_to_smem %s11_s17, 16, %s750_s18, [#allocation2] }
   0x3   :  { %712 = dma.done.wait [#allocation2], 16 }
   0x4   :  { %713 = vsyncadd [#allocation2], 4294967280 }
   0x5   :  { %16 = sfence }
   0x6   :  { %17 = vsyncpa [#allocation6], 0 }
   0x7   :  { %19 = vsyncpa [#allocation6 + $0x1], 0  ;;  %s784_s19 = smov 0   ;;  %s786_s20 = smov 0  }
   0x8   :  { %s788_s21 = smov 0   ;;  %s790_s22 = smov 0  }
   0x9   :  { %s792_s23 = smov 0   ;;  %s794_s24 = smov 0  }
   0xa   :  { %s796_s0 = smov 0   ;;  %s798_s25 = smov 0  }
   0xb LB: > { %s535_s26 = sadd.s32 4294967295, %s748_s25   ;;  %s536_s27 = sadd.s32 4294967294, %s748_s25   ;;  %s748_s25 = sphi %s798_s25, %s25_s25   ;;  %s744_s0 = sphi %s796_s0, %s943_s0   ;;  %s740_s24 = sphi %s794_s24, %s942_s24   ;;  %s736_s23 = sphi %s792_s23, %s941_s23   ;;  %s732_s22 = sphi %s790_s22, %s940_s22   ;;  %s728_s21 = sphi %s788_s21, %s939_s21   ;;  %s724_s20 = sphi %s786_s20, %s938_s20   ;;  %s720_s19 = sphi %s784_s19, %s937_s19  }
   0xc   : > { %s34_s28 = sadd.s32 1, %s740_s24  ;;  %s37_s29 = sadd.s32 1, %s744_s0 }
   0xd   : > { %p35_p0 = scmp.ge.s32.totalorder %s34_s28, 3  ;;  %p53_p1 = scmp.ne.s32.totalorder %s728_s21, %s724_s20 }
   0xe   : > { %p54_p2 = scmp.eq.s32.totalorder %s748_s25, 0  ;;  %p141_p5 = scmp.eq.s32.totalorder %s535_s26, 5 }
   0xf   : > { %s945_s28 = smov (%p35_p0, %s34_s28), 0  ;;  %s947_s29 = smov (!%p35_p0, %s37_s29), %s744_s0 }
  0x10   : > { %s42_s30 = ssub.s32 %s740_s24, %s945_s28  ;;  %p836_p3 = por %p54_p2, %p53_p1 }
  0x11   : > { %p39_p4 = scmp.ge.s32.totalorder %s947_s29, 2  ;;  %p146_p6 = scmp.ne.s32.totalorder %s724_s20, %s720_s19 }
  0x12   : > { %p147_p7 = scmp.eq.s32.totalorder %s536_s27, 5  ;;  %p844_p8 = por %p141_p5, %p53_p1 }
  0x13   : > { %s949_s29 = smov (%p39_p4, %s947_s29), 0  ;;  %s46_s10 = sadd.s32 1, %s728_s21 }
  0x14   : > { %p848_p9 = por %p147_p7, %p146_p6  ;;  %s41_s8 = ssub.s32 %s744_s0, %s949_s29 }
  0x15   : > { %s43_s9 = sor.u32 %s42_s30, %s41_s8  ;;  %p538_p11 = scmp.ge.s32.totalorder %s748_s25, 6 }
  0x16   : > { %p44_p10 = scmp.eq.s32.totalorder %s43_s9, 0 }
  0x17   : > { %163 = sbr.rel (%p538_p11) target bundleno = 39 (0x27), region = 16 }
  0x18   : > { %s856_s11 = scalar_select %p44_p10, %s728_s21, %s46_s10  }
  0x1c   : > { %166 = sbr.rel (!%p836_p3) target bundleno = 39 (0x27), region = 20  ;;  %s168_s12 = sand.u32 (%p836_p3), 1, %s728_s21  }
  0x1d   : > { %s554_s13 = smul.u32 (%p836_p3), 12, %s744_s0  ;;  %s539_s14 = sshll.u32 (%p836_p3), %s168_s12, 5 }
  0x1e   : > { %s170_s27 = scalar_lea.vmem (%p836_p3), [#allocation4], %s539_s14 }
  0x1f   : > { %s172_s15 = sadd.s32 (%p836_p3), %s740_s24, %s554_s13 }
  0x20   : > { %s540_s16 = sshll.u32 (%p836_p3), %s172_s15, 3 }
  0x21   : > { %s174_s26 = scalar_lea.vmem %s930_s1, %s540_s16 }
  0x22   : > { %v209_v0 = vld [vmem:[%s174_s26] sm:$0xff]  ;;  %v211_v1 = vld [vmem:[%s174_s26 + $0x18] sm:$0xff]  ;;  %v213_v2 = vld [vmem:[%s174_s26 + $0x30] sm:$0xff] }
  0x23   : > { %210 = vst [vmem:[%s170_s27] sm:$0xff] %v209_v0  ;;  %v215_v3 = vld [vmem:[%s174_s26 + $0x48] sm:$0xff] }
  0x24   : > { %212 = vst [vmem:[%s170_s27 + $0x8] sm:$0xff] %v211_v1 }
  0x25   : > { %214 = vst [vmem:[%s170_s27 + $0x10] sm:$0xff] %v213_v2 }
  0x26   : > { %216 = vst [vmem:[%s170_s27 + $0x18] sm:$0xff] %v215_v3 }
  0x27 PF: > { %p541_p12 = scmp.ge.s32.totalorder %s748_s25, 1  ;;  %p241_p13 = scmp.lt.s32.totalorder %s748_s25, 7 }
  0x29   : > { %p242_p0 = pnand %p541_p12, %p241_p13 }
  0x2a   : > { %s283_s30 = sld [smem:[#allocation3 + %s732_s22]] (!%p242_p0)  ;;  %s248_s17 = sand.u32 (!%p242_p0), 1, %s724_s20  }
  0x2b   : > { %245 = sbr.rel (%p242_p0) target bundleno = 193 (0xc1), region = 66  ;;  %s290_s5 = sld [smem:[#allocation3 + %s732_s22]] (!%p242_p0) }
  0x2c   : > { %s880_s18 = sshll.u32 (!%p242_p0), %s248_s17, 5  ;;  %s555_s27 = smul.u32 (!%p242_p0), 12, %s736_s23 }
  0x2d   : > { %s250_s26 = scalar_lea.vmem (!%p242_p0), [#allocation4], %s880_s18 }
  0x30   : > { %v751_v4 = vmov 0   ;;  %p284_p1 = scmp.lt.s32.totalorder %s283_s30, 2  ;;  %v297_v13 = vld [vmem:[%s250_s26] sm:$0xff]  ;;  %v298_v14 = vld [vmem:[%s250_s26 + $0x8] sm:$0xff]  ;;  %v299_v16 = vld [vmem:[%s250_s26 + $0x10] sm:$0xff]  ;;  %v752_v17 = vmov 32.0  }
  0x31   : > { %634 = vset.pattern.permute.xlu1 %v751_v4  ;;  %633 = vset.pattern.permute.xlu0 %v751_v4  ;;  %p291_p2 = scmp.lt.s32.totalorder %s290_s5, 2  ;;  %v301_v15 = vadd.f32 %v298_v14, %v297_v13  ;;  %636 = vrcp.f32 %v752_v17  ;;  %v300_v19 = vld [vmem:[%s250_s26 + $0x18] sm:$0xff]  ;;  %s672_s26 = scalar_lea.hbm %s933_s4, 192 }
  0x32   : > { %635 = vset.pattern.permute.xlu2 %v751_v4  ;;  %s951_s30 = smov (!%p284_p1, %s283_s30), 2 }
  0x33   : > { %s953_s5 = smov (!%p291_p2, %s290_s5), 2  ;;  %s552_s8 = sshll.u32 %s951_s30, 5  ;;  %v302_v18 = vadd.f32 %v301_v15, %v299_v16 }
  0x34   : > { %s288_s12 = scalar_lea.vmem %s931_s2, %s552_s8  ;;  %s553_s13 = sshll.u32 %s953_s5, 5 }
  0x35   : > { %v353_v5 = vld [vmem:[%s288_s12 + $0x10] sm:$0xff]  ;;  %v351_v6 = vld [vmem:[%s288_s12] sm:$0xff]  ;;  %s295_s16 = scalar_lea.vmem %s932_s3, %s553_s13  ;;  %v354_v8 = vld [vmem:[%s288_s12 + $0x18] sm:$0xff]  ;;  %v303_v20 = vadd.f32 %v302_v18, %v300_v19  ;;  %s282_s30 = scalar_lea.vmem [#allocation5], %s880_s18 }
  0x36   : > { %367 = vperm.xlu1 %634, %v353_v5   ;;  %357 = vperm.xlu0 %633, %v351_v6   ;;  %v379_v7 = vld [vmem:[%s295_s16] sm:$0xff]  ;;  %v352_v9 = vld [vmem:[%s288_s12 + $0x8] sm:$0xff]  ;;  %v382_v11 = vld [vmem:[%s295_s16 + $0x18] sm:$0xff]  ;;  %s422_s5 = sadd.s32 %s732_s22, %s555_s27  ;;  %s425_s13 = sshll.u32 %s282_s30, 4  ;;  %s426_s13 = int_to_ptr.vmem [resolvable:$true] %s425_s13 }
  0x37   : > { %385 = vperm.xlu2 %635, %v379_v7   ;;  %v380_v10 = vld [vmem:[%s295_s16 + $0x8] sm:$0xff]  ;;  %v381_v12 = vld [vmem:[%s295_s16 + $0x10] sm:$0xff]  ;;  %v304_v21 = vrot.slane %v303_v20, 4  ;;  %v637_v22 = vpop.eup %636  ;;  %s549_s8 = sshll.u32 %s422_s5, 3  ;;  %s412_s22 = scalar_lea.sflag [#allocation6], %s248_s17 }
  0x38   : > { %v311_v24 = vmul.f32 32.0, %v637_v22  ;;  %vm315_vm0 = vweird.f32 %v637_v22  ;;  %s424_s12 = scalar_lea.hbm %s933_s4, %s549_s8 }
  0x39   : > { %v305_v23 = vadd.f32 %v304_v21, %v303_v20  ;;  %s427_s23 = sshll.u32 %s424_s12, 4  ;;  %s428_s23 = int_to_ptr.hbm [resolvable:$true] %s427_s23 }
  0x3a   : > { %v312_v26 = vsub.f32 1.0, %v311_v24  ;;  %s666_s14 = sshra.s32 %s428_s23, 4  ;;  %s667_s14 = int_to_ptr.hbm [resolvable:$true] %s666_s14 }
  0x3b   : > { %v306_v25 = vrot.slane %v305_v23, 2  ;;  %s668_s15 = scalar_lea.hbm %s667_s14, 32  ;;  %p673_p6 = scmp.lt.s32.totalorder %s667_s14, %s933_s4 }
  0x3c   : > { %v313_v28 = vmul.f32 %v637_v22, %v312_v26  ;;  %p669_p3 = scmp.ne.s32.totalorder %s667_s14, %s668_s15  ;;  %p674_p7 = scmp.lt.s32.totalorder %s672_s26, %s668_s15 }
  0x3d   : > { %v307_v27 = vadd.f32 %v306_v25, %v305_v23 }
  0x3e   : > { %372 = vperm.xlu1 %634, %v354_v8   ;;  %362 = vperm.xlu0 %633, %v352_v9   ;;  %v314_v30 = vadd.f32 %v637_v22, %v313_v28  ;;  %p670_p4 = pnand %p669_p3, %p844_p8  ;;  %p675_p10 = por %p674_p7, %p673_p6 }
  0x3f   : > { %390 = vperm.xlu2 %635, %v380_v10   ;;  %v308_v29 = vrot.slane %v307_v27, 1 }
  0x40   : > { %v316_v32 = vsel %vm315_vm0, %v637_v22, %v314_v30  ;;  %p671_p5 = pneg %p670_p4 }
  0x41   : > { %v309_v31 = vadd.f32 %v308_v29, %v307_v27 }
  0x42   : > { %p676_p11 = pnand %p675_p10, %p671_p5 }
  0x43   : > { %v317_v33 = vmul.f32 %v316_v32, %v309_v31 }
  0x45   : > { %v318_v34 = vsub.f32 %v297_v13, %v317_v33  ;;  %v319_v35 = vsub.f32 %v298_v14, %v317_v33  ;;  %v320_v36 = vsub.f32 %v299_v16, %v317_v33  ;;  %v321_v39 = vsub.f32 %v300_v19, %v317_v33 }
  0x46   : > { %400 = vperm.xlu1 %634, %v382_v11   ;;  %395 = vperm.xlu0 %633, %v381_v12  }
  0x47   : > { %v322_v37 = vmul.f32 %v318_v34, %v318_v34  ;;  %v323_v38 = vmul.f32 %v319_v35, %v319_v35  ;;  %v324_v40 = vmul.f32 %v320_v36, %v320_v36  ;;  %v325_v42 = vmul.f32 %v321_v39, %v321_v39 }
  0x49   : > { %v326_v41 = vadd.f32 %v323_v38, %v322_v37 }
  0x4b   : > { %v327_v43 = vadd.f32 %v326_v41, %v324_v40 }
  0x4d   : > { %v328_v44 = vadd.f32 %v327_v43, %v325_v42 }
  0x4f   : > { %v329_v45 = vrot.slane %v328_v44, 4 }
  0x51   : > { %v330_v46 = vadd.f32 %v329_v45, %v328_v44 }
  0x53   : > { %v331_v47 = vrot.slane %v330_v46, 2 }
  0x55   : > { %v332_v48 = vadd.f32 %v331_v47, %v330_v46 }
  0x57   : > { %v333_v49 = vrot.slane %v332_v48, 1 }
  0x59   : > { %v334_v50 = vadd.f32 %v333_v49, %v332_v48 }
  0x5b   : > { %v335_v51 = vmul.f32 %v334_v50, %v316_v32 }
  0x5d   : > { %v336_v52 = vadd.f32 1e-05, %v335_v51 }
  0x5f   : > { %638 = vrsqrt.f32 %v336_v52  ;;  %vm343_vm1 = vweird.f32 %v336_v52 }
  0x65   : > { %v639_v53 = vpop.eup %638 }
  0x66   : > { %v338_v54 = vmul.f32 %v639_v53, %v336_v52  ;;  %vm344_vm2 = vweird.f32 %v639_v53 }
  0x67   : > { %vm345_vm3 = vmor %vm343_vm1, %vm344_vm2 }
  0x68   : > { %v339_v55 = vmul.f32 %v639_v53, %v338_v54 }
  0x6a   : > { %v340_v56 = vmul.f32 0.5, %v339_v55 }
  0x6c   : > { %v341_v57 = vsub.f32 1.5, %v340_v56 }
  0x6e   : > { %v342_v58 = vmul.f32 %v639_v53, %v341_v57 }
  0x70   : > { %v346_v59 = vsel %vm345_vm3, %v639_v53, %v342_v58 }
  0x71   : > { %v347_v60 = vmul.f32 %v346_v59, %v318_v34  ;;  %v348_v2 = vmul.f32 %v346_v59, %v319_v35  ;;  %v349_v7 = vmul.f32 %v346_v59, %v320_v36  ;;  %v350_v8 = vmul.f32 %v346_v59, %v321_v39 }
  0x91   : > { %v386_v61 = vpop.permute.xlu2 %385 }
  0x99   : > { %v391_v6 = vpop.permute.xlu2 %390 }
  0xa8   : > { %v368_v62 = vpop.permute.xlu1 %367  ;;  %v358_v63 = vpop.permute.xlu0 %357 }
  0xa9   : > { %v375_v0 = vmul.f32 %v358_v63, %v347_v60  ;;  %v377_v10 = vmul.f32 %v368_v62, %v349_v7 }
  0xab   : > { %v403_v1 = vadd.f32 %v386_v61, %v375_v0 }
  0xad   : > { %407 = vst [vmem:[%s282_s30] sm:$0xff] %v403_v1 }
  0xb0   : > { %v373_v3 = vpop.permute.xlu1 %372  ;;  %v363_v4 = vpop.permute.xlu0 %362 }
  0xb1   : > { %v376_v5 = vmul.f32 %v363_v4, %v348_v2  ;;  %v378_v11 = vmul.f32 %v373_v3, %v350_v8 }
  0xb3   : > { %v404_v9 = vadd.f32 %v391_v6, %v376_v5 }
  0xb5   : > { %408 = vst [vmem:[%s282_s30 + $0x8] sm:$0xff] %v404_v9 }
  0xb8   : > { %v401_v12 = vpop.permute.xlu1 %400  ;;  %v396_v13 = vpop.permute.xlu0 %395 }
  0xb9   : > { %v406_v14 = vadd.f32 %v401_v12, %v378_v11  ;;  %v405_v15 = vadd.f32 %v396_v13, %v377_v10 }
  0xbb   : > { %410 = vst [vmem:[%s282_s30 + $0x18] sm:$0xff] %v406_v14 }
  0xbc   : > { %409 = vst [vmem:[%s282_s30 + $0x10] sm:$0xff] %v405_v15 }
  0xbd   : > { %679 = shalt.err (!%p676_p11)
}
  0xbe   : > { %s753_s17 = smov 128   ;;  %s754_s30 = smov 384  }
  0xbf   : > { %s755_s8 = smov 8  }
  0xc0   : > { %556 = dma.vmem_to_hbm [thread:$0]  (%p844_p8), %s426_s13, 512, %s428_s23, %s412_s22, %s753_s17, %s754_s30, %s755_s8  }
  0xc1 PF: > { %p562_p12 = scmp.ge.s32.totalorder %s748_s25, 2  ;;  %s442_s9 = sand.u32 1, %s720_s19  }
  0xc2   : > { %s443_s10 = scalar_lea.sflag [#allocation6], %s442_s9 }
  0xc3   : > { %p559_p13 = pnand %p562_p12, %p848_p9 }
  0xc5   : > { %p560_p0 = pneg %p559_p13 }
  0xc7   : > { %715 = dma.done.wait (%p560_p0), %s443_s10, 512  }
  0xc8   : > { %717 = vsyncadd (%p560_p0), %s443_s10, 4294966784  ;;  %s25_s25 = sadd.s32 1, %s748_s25   ;;  %s937_s19 = smov %s724_s20 }
  0xc9   : > { %p22_p1 = scmp.ge.s32.totalorder %s25_s25, 8   ;;  %s938_s20 = smov %s728_s21 }
  0xca   : > { %s939_s21 = smov %s856_s11  ;;  %s940_s22 = smov %s740_s24 }
  0xcb   : > { %s941_s23 = smov %s744_s0  ;;  %s942_s24 = smov %s945_s28 }
  0xcc   : > { %s943_s0 = smov %s949_s29  ;;  %24 = sbr.rel (!%p22_p1) target bundleno = 11 (0xb), region = 116 }
  0xd1   :  { %449 = vsyncpa [#allocation6], 1 }
  0xd2   :  { %451 = vsyncpa [#allocation6 + $0x1], 1 }

</bundles_post_ra>
